<compile_context>
chip_gen: v5e
topology: v5e:2x2
jax: 0.10.0
libtpu: 0.0.40
codegen_flags: <defaults>
</compile_context>

<pallas_src>
import jax
import jax.numpy as jnp
from jax import lax
from jax.experimental import pallas as pl
from jax.experimental.pallas import tpu as pltpu

_NEG_BIG = -9000000000000000.0  # same constant as the PyTorch module


def att_kernel(x_ref, mask_ref, wqkv_ref, bqkv_ref, wo_ref, bo_ref, out_ref):
    bt, n, din = x_ref.shape
    hp = wqkv_ref.shape[1] // 3
    cd = x_ref.dtype                      # MXU operand dtype (f32 or bf16)

    # Fused q/k/v projection: one MXU pass, f32 accumulation, bias+ReLU in f32.
    x2d = x_ref[...].reshape(bt * n, din)
    qkv = jnp.dot(x2d, wqkv_ref[...], preferred_element_type=jnp.float32)
    qkv = jnp.maximum(qkv + bqkv_ref[...], 0.0)            # (bt*n, 3*hp) f32

    # 128-aligned lane slices -> (bt, n, hp).  Padded lanes are exactly zero
    # (zero weight columns + zero bias + ReLU), so they do not affect results.
    # NOTE: when hidden << 128 this pads each segment up to 128 lanes; it is
    # negligible at these sizes but worth revisiting (pad only the fused 3H)
    # once the kernel becomes MXU/VMEM-bound at large N/H.
    q = qkv[:, 0 * hp:1 * hp].reshape(bt, n, hp).astype(cd)
    k = qkv[:, 1 * hp:2 * hp].reshape(bt, n, hp).astype(cd)
    v = qkv[:, 2 * hp:3 * hp].reshape(bt, n, hp).astype(cd)

    # Attention logits: batched contraction of the feature axis directly on
    # the MXU -- explicit dot_general so no k-transpose can be materialized.
    logits = lax.dot_general(
        q, k, dimension_numbers=(((2,), (2,)), ((0,), (0,))),
        preferred_element_type=jnp.float32)

    # Masked softmax in f32.  The mask is a 0/1 (int8) adjacency, so a single
    # select is exactly `logits*mask - 9e15*(1-mask)` from the reference.
    logits = jnp.where(mask_ref[...] != 0, logits, _NEG_BIG)
    m = jnp.max(logits, axis=-1, keepdims=True)
    e = jnp.exp(logits - m)
    denom = jnp.sum(e, axis=-1, keepdims=True)
    # approx=False keeps the tight test tolerance; flip to approx=True (EUP
    # vrcp slot) for production configs where ~1e-3 softmax error is fine.
    att = e * pl.reciprocal(denom, approx=False)

    # Attention-weighted value mix + output projection (+ bias, ReLU).
    mixed = lax.dot_general(
        att.astype(cd), v, dimension_numbers=(((2,), (1,)), ((0,), (0,))),
        preferred_element_type=jnp.float32)
    mixed = mixed.reshape(bt * n, hp).astype(cd)
    out = jnp.dot(mixed, wo_ref[...], preferred_element_type=jnp.float32)
    out = jnp.maximum(out + bo_ref[...], 0.0)
    out_ref[...] = out.reshape(bt, n, -1).astype(out_ref.dtype)


def _round_up(x, m):
    return ((x + m - 1) // m) * m


def _vmem_budget_bytes():
    """Generation-aware VMEM budget: ~75% of physical VMEM per TensorCore."""
    cap = 0
    try:
        info = pltpu.get_tpu_info()
        cap = int(getattr(info, "vmem_capacity_bytes", 0) or 0)
    except Exception:
        cap = 0
    if cap <= 0:
        cap = 64 * 1024 * 1024           # conservative fallback (v7x per-TC)
    return (cap * 3) // 4                # ~48 MiB v7x, ~96 MiB v5e/v6e


def _pick_batch_tile(b, n_p, din, hp, doutp, in_bytes, out_bytes,
                     weight_bytes, budget):
    """Largest batch tile whose per-step VMEM footprint fits the budget,
    capped at max(1, B//2) so the grid keeps >=2 parallel steps (v7x 2 TCs)."""
    def per_step(bt):
        x_blk = 2 * bt * n_p * din * in_bytes         # double-buffered input
        m_blk = 2 * bt * n_p * n_p * 1                # int8 mask, dbl-buffered
        o_blk = 2 * bt * n_p * doutp * out_bytes      # double-buffered output
        tmps = (bt * n_p * (4 * hp + doutp) * 4       # qkv/mixed/out f32 temps
                + 3 * bt * n_p * n_p * 4)             # logits / exp / att f32
        return x_blk + m_blk + o_blk + tmps + weight_bytes
    cap = max(1, b // 2)
    best = 1
    for bt in range(1, cap + 1):
        if b % bt == 0 and per_step(bt) <= budget:
            best = bt
    return best


def _pack_params(params, hp, doutp, compute_dtype):
    """Fuse q/k/v projections into one (Din, 3*Hp) matrix; lane-pad everything."""
    din = params["wq"].shape[0]

    def pad2(a, rows, cols):
        return jnp.pad(a, ((0, rows - a.shape[0]), (0, cols - a.shape[1])))

    wqkv = jnp.concatenate(
        [pad2(params["wq"], din, hp),
         pad2(params["wk"], din, hp),
         pad2(params["wv"], din, hp)], axis=1).astype(compute_dtype)
    bqkv = jnp.concatenate(
        [pad2(params["bq"], 1, hp),
         pad2(params["bk"], 1, hp),
         pad2(params["bv"], 1, hp)], axis=1).astype(jnp.float32)
    wo = pad2(params["wo"], hp, doutp).astype(compute_dtype)
    bo = pad2(params["bo"], 1, doutp).astype(jnp.float32)
    return wqkv, bqkv, wo, bo


def att_model_forward(x, mask, params, *, compute_dtype=jnp.float32,
                      out_dtype=jnp.float32, lane_multiple=128,
                      return_padded=False):
    """x: (B, N, Din), mask: (B, N, N) 0/1 adjacency, params dict -> (B, N, Dout).

    compute_dtype=jnp.bfloat16 halves x/weight DMA and feeds the MXU bf16
    operands at full rate on v5e, v6e and v7x alike (accumulation, bias and
    softmax math stay f32 on every generation).  lane_multiple=256 is worth
    trying on v6e/v7x (2x256x256 MXU) when hidden/dout are large.
    return_padded=True hands back the (B, Np, Doutp) padded slab so consumers
    can fuse the un-pad and skip an extra HBM pass.
    """
    B, N, Din = x.shape
    H = params["wq"].shape[1]
    Dout = params["wo"].shape[1]
    Hp = _round_up(H, lane_multiple)
    Doutp = _round_up(Dout, lane_multiple)
    Np = _round_up(N, 8)                   # sublane-align the node axis

    wqkv, bqkv, wo, bo = _pack_params(params, Hp, Doutp, compute_dtype)
    weight_bytes = 2 * (wqkv.nbytes + bqkv.nbytes + wo.nbytes + bo.nbytes)

    x_c = x.astype(compute_dtype)
    mask_i8 = (mask != 0).astype(jnp.int8)     # 0/1 adjacency -> 1 byte/elem
    if Np != N:
        # Padded key columns have mask==0 (softmax weight underflows to 0),
        # padded query rows are sliced off below.
        x_c = jnp.pad(x_c, ((0, 0), (0, Np - N), (0, 0)))
        mask_i8 = jnp.pad(mask_i8, ((0, 0), (0, Np - N), (0, Np - N)))

    budget = _vmem_budget_bytes()
    in_bytes = jnp.dtype(compute_dtype).itemsize
    out_bytes = jnp.dtype(out_dtype).itemsize
    bt = _pick_batch_tile(B, Np, Din, Hp, Doutp, in_bytes, out_bytes,
                          weight_bytes, budget)
    grid = (B // bt,)
    # TODO(synk): add a flash-style key-axis grid dimension (online softmax
    # with m/l/acc VMEM scratch) once the per-step footprint nears half of
    # VMEM (roughly Np >= 768 with bt=1 in f32 on v7x's 64 MiB).

    flops = int(B * (2 * Np * Din * 3 * Hp + 4 * Np * Np * Hp
                     + 2 * Np * Hp * Doutp))
    bytes_accessed = int(x_c.nbytes + mask_i8.nbytes + wqkv.nbytes
                         + bqkv.nbytes + wo.nbytes + bo.nbytes
                         + B * Np * Doutp * out_bytes)
    cost = pl.CostEstimate(flops=flops, transcendentals=int(B * Np * Np),
                           bytes_accessed=bytes_accessed)

    def run(single_buffer_weights):
        # Grid-invariant operands: constant index map (DMA'd once).  When
        # supported, Buffered(1) also drops their reserved second buffer.
        wmode = ({"pipeline_mode": pl.Buffered(1)}
                 if single_buffer_weights else {})
        const2d = lambda b: (0, 0)
        return pl.pallas_call(
            att_kernel,
            out_shape=jax.ShapeDtypeStruct((B, Np, Doutp), out_dtype),
            grid_spec=pltpu.PrefetchScalarGridSpec(
                num_scalar_prefetch=0,
                grid=grid,
                in_specs=[
                    pl.BlockSpec((bt, Np, Din), lambda b: (b, 0, 0)),   # x
                    pl.BlockSpec((bt, Np, Np), lambda b: (b, 0, 0)),    # mask
                    pl.BlockSpec((Din, 3 * Hp), const2d, **wmode),      # W_qkv
                    pl.BlockSpec((1, 3 * Hp), const2d, **wmode),        # b_qkv
                    pl.BlockSpec((Hp, Doutp), const2d, **wmode),        # W_out
                    pl.BlockSpec((1, Doutp), const2d, **wmode),         # b_out
                ],
                out_specs=pl.BlockSpec((bt, Np, Doutp), lambda b: (b, 0, 0)),
            ),
            compiler_params=pltpu.CompilerParams(
                dimension_semantics=("parallel",),
                vmem_limit_bytes=int(budget)),
            cost_estimate=cost,
        )(x_c, mask_i8, wqkv, bqkv, wo, bo)

    try:
        out = run(True)       # single-buffer the grid-invariant weights
    except Exception:
        out = run(False)      # fallback: default double-buffered weights

    if return_padded:
        return out            # (B, Np, Doutp) lane-dense slab, no extra pass
    return out[:, :N, :Dout]


def reference_forward(x, mask, p):
    """Plain-JAX reference matching the PyTorch forward exactly (f32)."""
    v = jax.nn.relu(x @ p["wv"] + p["bv"])
    q = jax.nn.relu(x @ p["wq"] + p["bq"])
    k = jax.nn.relu(x @ p["wk"] + p["bk"])
    logits = jnp.einsum("bnd,bmd->bnm", q, k) * mask \
        - 9000000000000000.0 * (1.0 - mask)
    att = jax.nn.softmax(logits, axis=-1)
    out = jnp.matmul(att, v)
    return jax.nn.relu(out @ p["wo"] + p["bo"])


def init_params(key, din, hidden, dout):
    ks = jax.random.split(key, 8)
    scale_in = 1.0 / jnp.sqrt(din)
    scale_h = 1.0 / jnp.sqrt(hidden)
    # Weights stored as (in, out) -- the transpose of nn.Linear.weight.
    return {
        "wv": jax.random.uniform(ks[0], (din, hidden), jnp.float32, -scale_in, scale_in),
        "bv": jax.random.uniform(ks[1], (1, hidden),   jnp.float32, -scale_in, scale_in),
        "wk": jax.random.uniform(ks[2], (din, hidden), jnp.float32, -scale_in, scale_in),
        "bk": jax.random.uniform(ks[3], (1, hidden),   jnp.float32, -scale_in, scale_in),
        "wq": jax.random.uniform(ks[4], (din, hidden), jnp.float32, -scale_in, scale_in),
        "bq": jax.random.uniform(ks[5], (1, hidden),   jnp.float32, -scale_in, scale_in),
        "wo": jax.random.uniform(ks[6], (hidden, dout), jnp.float32, -scale_h, scale_h),
        "bo": jax.random.uniform(ks[7], (1, dout),      jnp.float32, -scale_h, scale_h),
    }


if __name__ == "__main__":
    key = jax.random.PRNGKey(0)

    # --- Test 1: canonical DGN shapes (B=2, N=8, din=hidden=dout=32). ------
    B, N, DIN, HID, DOUT = 2, 8, 32, 32, 32
    kx, kmask, kparam, key = jax.random.split(key, 4)
    x = jax.random.normal(kx, (B, N, DIN), jnp.float32)
    # Random 0/1 adjacency mask with self-connections guaranteed.
    mask = (jax.random.uniform(kmask, (B, N, N)) > 0.5).astype(jnp.float32)
    mask = jnp.maximum(mask, jnp.eye(N, dtype=jnp.float32)[None])
    params = init_params(kparam, DIN, HID, DOUT)
    ref = reference_forward(x, mask, params)

    # f32 path: exact module semantics, tight tolerance.
    out = jax.block_until_ready(att_model_forward(x, mask, params))
    assert out.shape == (B, N, DOUT)
    assert jnp.allclose(out, ref, atol=1e-4, rtol=1e-4)

    # bf16 MXU-operand fast path (valid on v5e/v6e/v7x): f32 accumulation and
    # f32 softmax, loose sanity tolerance against the f32 reference.
    out_bf16 = jax.block_until_ready(
        att_model_forward(x, mask, params, compute_dtype=jnp.bfloat16))
    assert out_bf16.shape == (B, N, DOUT)
    assert jnp.allclose(out_bf16, ref, atol=1e-1, rtol=1e-1)

    # --- Test 2: ragged shapes (N % 8 != 0, odd dims) exercising the sublane
    # padding path and the >=2-step grid. ----------------------------------
    B2, N2, DIN2, HID2, DOUT2 = 3, 10, 24, 20, 36
    kx2, kmask2, kparam2, key = jax.random.split(key, 4)
    x2 = jax.random.normal(kx2, (B2, N2, DIN2), jnp.float32)
    mask2 = (jax.random.uniform(kmask2, (B2, N2, N2)) > 0.4).astype(jnp.float32)
    mask2 = jnp.maximum(mask2, jnp.eye(N2, dtype=jnp.float32)[None])
    params2 = init_params(kparam2, DIN2, HID2, DOUT2)
    ref2 = reference_forward(x2, mask2, params2)
    out2 = jax.block_until_ready(att_model_forward(x2, mask2, params2))
    assert out2.shape == (B2, N2, DOUT2)
    assert jnp.allclose(out2, ref2, atol=1e-4, rtol=1e-4)

    print("KERNEL_OK")
</pallas_src>

<mosaic_0001>
module attributes {stable_mosaic.version = 11 : i64} {
  func.func @att_kernel(%arg0: i32, %arg1: memref<1x8x32xf32, #tpu.memory_space<vmem>>, %arg2: memref<1x8x8xi8, #tpu.memory_space<vmem>>, %arg3: memref<32x384xf32, #tpu.memory_space<vmem>>, %arg4: memref<1x384xf32, #tpu.memory_space<vmem>>, %arg5: memref<128x128xf32, #tpu.memory_space<vmem>>, %arg6: memref<1x128xf32, #tpu.memory_space<vmem>>, %arg7: memref<1x8x128xf32, #tpu.memory_space<vmem>>) attributes {dimension_semantics = [#tpu.dimension_semantics<parallel>], iteration_bounds = array<i64: 2>, scalar_prefetch = 0 : i64, scratch_operands = 0 : i64, tpu.core_type = #tpu.core_type<tc>, window_params = [{transform_indices = @transform_0, window_bounds = array<i64: 1, 8, 32>}, {transform_indices = @transform_1, window_bounds = array<i64: 1, 8, 8>}, {pipeline_mode = #tpu.pipeline_mode<synchronous>, transform_indices = @transform_2, window_bounds = array<i64: 32, 384>}, {pipeline_mode = #tpu.pipeline_mode<synchronous>, transform_indices = @transform_3, window_bounds = array<i64: 1, 384>}, {pipeline_mode = #tpu.pipeline_mode<synchronous>, transform_indices = @transform_4, window_bounds = array<i64: 128, 128>}, {pipeline_mode = #tpu.pipeline_mode<synchronous>, transform_indices = @transform_5, window_bounds = array<i64: 1, 128>}, {transform_indices = @transform_6, window_bounds = array<i64: 1, 8, 128>}]} {
    %c0 = arith.constant 0 : index
    %c0_0 = arith.constant 0 : index
    %c0_1 = arith.constant 0 : index
    %0 = vector.load %arg1[%c0, %c0_0, %c0_1] : memref<1x8x32xf32, #tpu.memory_space<vmem>>, vector<1x8x32xf32>
    %1 = vector.shape_cast %0 : vector<1x8x32xf32> to vector<8x32xf32>
    %c0_2 = arith.constant 0 : index
    %c0_3 = arith.constant 0 : index
    %2 = vector.load %arg3[%c0_2, %c0_3] : memref<32x384xf32, #tpu.memory_space<vmem>>, vector<32x384xf32>
    %cst = arith.constant dense<0.000000e+00> : vector<8x384xf32>
    %3 = tpu.matmul %1, %2, %cst {dimension_numbers = #tpu.dot_dimension_numbers<[1], [0], [0], [1], [0, 0, 1, 1], [], []>} : vector<8x32xf32>, vector<32x384xf32>, vector<8x384xf32> -> vector<8x384xf32>
    %c0_4 = arith.constant 0 : index
    %c0_5 = arith.constant 0 : index
    %4 = vector.load %arg4[%c0_4, %c0_5] : memref<1x384xf32, #tpu.memory_space<vmem>>, vector<1x384xf32>
    %5 = vector.broadcast %4 : vector<1x384xf32> to vector<8x384xf32>
    %6 = arith.addf %3, %5 : vector<8x384xf32>
    %cst_6 = arith.constant 0.000000e+00 : f32
    %7 = vector.broadcast %cst_6 : f32 to vector<8x384xf32>
    %8 = arith.maximumf %6, %7 : vector<8x384xf32>
    %9 = vector.extract_strided_slice %8 {offsets = [0, 0], sizes = [8, 128], strides = [1, 1]} : vector<8x384xf32> to vector<8x128xf32>
    %10 = vector.shape_cast %9 : vector<8x128xf32> to vector<1x8x128xf32>
    %11 = vector.extract_strided_slice %8 {offsets = [0, 128], sizes = [8, 128], strides = [1, 1]} : vector<8x384xf32> to vector<8x128xf32>
    %12 = vector.shape_cast %11 : vector<8x128xf32> to vector<1x8x128xf32>
    %13 = vector.extract_strided_slice %8 {offsets = [0, 256], sizes = [8, 128], strides = [1, 1]} : vector<8x384xf32> to vector<8x128xf32>
    %14 = vector.shape_cast %13 : vector<8x128xf32> to vector<1x8x128xf32>
    %cst_7 = arith.constant dense<0.000000e+00> : vector<1x8x8xf32>
    %15 = tpu.matmul %10, %12, %cst_7 {dimension_numbers = #tpu.dot_dimension_numbers<[2], [2], [1], [1], [0, 0, 0, 1, 1, 1], [0], [0]>} : vector<1x8x128xf32>, vector<1x8x128xf32>, vector<1x8x8xf32> -> vector<1x8x8xf32>
    %c0_8 = arith.constant 0 : index
    %c0_9 = arith.constant 0 : index
    %c0_10 = arith.constant 0 : index
    %16 = vector.load %arg2[%c0_8, %c0_9, %c0_10] : memref<1x8x8xi8, #tpu.memory_space<vmem>>, vector<1x8x8xi8>
    %c0_i8 = arith.constant 0 : i8
    %17 = vector.broadcast %c0_i8 : i8 to vector<1x8x8xi8>
    %18 = arith.cmpi ne, %16, %17 : vector<1x8x8xi8>
    %cst_11 = arith.constant -9.000000e+15 : f32
    %19 = vector.broadcast %cst_11 : f32 to vector<1x8x8xf32>
    %20 = arith.select %18, %15, %19 : vector<1x8x8xi1>, vector<1x8x8xf32>
    %cst_12 = arith.constant dense<0xFF800000> : vector<1x8xf32>
    %21 = vector.multi_reduction <maximumf>, %20, %cst_12 [2] : vector<1x8x8xf32> to vector<1x8xf32>
    %22 = vector.shape_cast %21 : vector<1x8xf32> to vector<1x8x1xf32>
    %23 = vector.broadcast %22 : vector<1x8x1xf32> to vector<1x8x8xf32>
    %24 = arith.subf %20, %23 : vector<1x8x8xf32>
    %25 = math.exp %24 : vector<1x8x8xf32>
    %cst_13 = arith.constant dense<0.000000e+00> : vector<1x8xf32>
    %26 = vector.multi_reduction <add>, %25, %cst_13 [2] : vector<1x8x8xf32> to vector<1x8xf32>
    %27 = vector.shape_cast %26 : vector<1x8xf32> to vector<1x8x1xf32>
    %28 = tpu.reciprocal %27 : vector<1x8x1xf32> -> vector<1x8x1xf32>
    %29 = vector.broadcast %28 : vector<1x8x1xf32> to vector<1x8x8xf32>
    %30 = arith.mulf %25, %29 : vector<1x8x8xf32>
    %cst_14 = arith.constant dense<0.000000e+00> : vector<1x8x128xf32>
    %31 = tpu.matmul %30, %14, %cst_14 {dimension_numbers = #tpu.dot_dimension_numbers<[2], [1], [1], [2], [0, 0, 0, 1, 1, 2], [0], [0]>} : vector<1x8x8xf32>, vector<1x8x128xf32>, vector<1x8x128xf32> -> vector<1x8x128xf32>
    %32 = vector.shape_cast %31 : vector<1x8x128xf32> to vector<8x128xf32>
    %c0_15 = arith.constant 0 : index
    %c0_16 = arith.constant 0 : index
    %33 = vector.load %arg5[%c0_15, %c0_16] : memref<128x128xf32, #tpu.memory_space<vmem>>, vector<128x128xf32>
    %cst_17 = arith.constant dense<0.000000e+00> : vector<8x128xf32>
    %34 = tpu.matmul %32, %33, %cst_17 {dimension_numbers = #tpu.dot_dimension_numbers<[1], [0], [0], [1], [0, 0, 1, 1], [], []>} : vector<8x128xf32>, vector<128x128xf32>, vector<8x128xf32> -> vector<8x128xf32>
    %c0_18 = arith.constant 0 : index
    %c0_19 = arith.constant 0 : index
    %35 = vector.load %arg6[%c0_18, %c0_19] : memref<1x128xf32, #tpu.memory_space<vmem>>, vector<1x128xf32>
    %36 = vector.broadcast %35 : vector<1x128xf32> to vector<8x128xf32>
    %37 = arith.addf %34, %36 : vector<8x128xf32>
    %cst_20 = arith.constant 0.000000e+00 : f32
    %38 = vector.broadcast %cst_20 : f32 to vector<8x128xf32>
    %39 = arith.maximumf %37, %38 : vector<8x128xf32>
    %40 = vector.shape_cast %39 : vector<8x128xf32> to vector<1x8x128xf32>
    %c0_21 = arith.constant 0 : index
    %c0_22 = arith.constant 0 : index
    %c0_23 = arith.constant 0 : index
    %41 = vector.load %arg7[%c0_21, %c0_22, %c0_23] : memref<1x8x128xf32, #tpu.memory_space<vmem>>, vector<1x8x128xf32>
    tpu.vector_store %arg7[%c0_21, %c0_22, %c0_23], %40 {strides = array<i32>} : memref<1x8x128xf32, #tpu.memory_space<vmem>>, vector<1x8x128xf32>,
    return
  }
  func.func @transform_0(%arg0: i32) -> (i32, i32, i32) {
    %c0_i32 = arith.constant 0 : i32
    %c0_i32_0 = arith.constant 0 : i32
    %c0_i32_1 = arith.constant 0 : i32
    return %arg0, %c0_i32, %c0_i32_0 : i32, i32, i32
  }
  func.func @transform_1(%arg0: i32) -> (i32, i32, i32) {
    %c0_i32 = arith.constant 0 : i32
    %c0_i32_0 = arith.constant 0 : i32
    %c0_i32_1 = arith.constant 0 : i32
    return %arg0, %c0_i32, %c0_i32_0 : i32, i32, i32
  }
  func.func @transform_2(%arg0: i32) -> (i32, i32) {
    %c0_i32 = arith.constant 0 : i32
    %c0_i32_0 = arith.constant 0 : i32
    %c0_i32_1 = arith.constant 0 : i32
    return %c0_i32, %c0_i32_0 : i32, i32
  }
  func.func @transform_3(%arg0: i32) -> (i32, i32) {
    %c0_i32 = arith.constant 0 : i32
    %c0_i32_0 = arith.constant 0 : i32
    %c0_i32_1 = arith.constant 0 : i32
    return %c0_i32, %c0_i32_0 : i32, i32
  }
  func.func @transform_4(%arg0: i32) -> (i32, i32) {
    %c0_i32 = arith.constant 0 : i32
    %c0_i32_0 = arith.constant 0 : i32
    %c0_i32_1 = arith.constant 0 : i32
    return %c0_i32, %c0_i32_0 : i32, i32
  }
  func.func @transform_5(%arg0: i32) -> (i32, i32) {
    %c0_i32 = arith.constant 0 : i32
    %c0_i32_0 = arith.constant 0 : i32
    %c0_i32_1 = arith.constant 0 : i32
    return %c0_i32, %c0_i32_0 : i32, i32
  }
  func.func @transform_6(%arg0: i32) -> (i32, i32, i32) {
    %c0_i32 = arith.constant 0 : i32
    %c0_i32_0 = arith.constant 0 : i32
    %c0_i32_1 = arith.constant 0 : i32
    return %arg0, %c0_i32, %c0_i32_0 : i32, i32, i32
  }
}

module attributes {stable_mosaic.version = 11 : i64} {
  func.func @att_kernel(%arg0: i32, %arg1: memref<1x8x32xf32, #tpu.memory_space<vmem>>, %arg2: memref<1x8x8xi8, #tpu.memory_space<vmem>>, %arg3: memref<32x384xf32, #tpu.memory_space<vmem>>, %arg4: memref<1x384xf32, #tpu.memory_space<vmem>>, %arg5: memref<128x128xf32, #tpu.memory_space<vmem>>, %arg6: memref<1x128xf32, #tpu.memory_space<vmem>>, %arg7: memref<1x8x128xf32, #tpu.memory_space<vmem>>) attributes {dimension_semantics = [#tpu.dimension_semantics<parallel>], iteration_bounds = array<i64: 2>, scalar_prefetch = 0 : i64, scratch_operands = 0 : i64, tpu.core_type = #tpu.core_type<tc>, window_params = [{transform_indices = @transform_0, window_bounds = array<i64: 1, 8, 32>}, {transform_indices = @transform_1, window_bounds = array<i64: 1, 8, 8>}, {pipeline_mode = #tpu.pipeline_mode<synchronous>, transform_indices = @transform_2, window_bounds = array<i64: 32, 384>}, {pipeline_mode = #tpu.pipeline_mode<synchronous>, transform_indices = @transform_3, window_bounds = array<i64: 1, 384>}, {pipeline_mode = #tpu.pipeline_mode<synchronous>, transform_indices = @transform_4, window_bounds = array<i64: 128, 128>}, {pipeline_mode = #tpu.pipeline_mode<synchronous>, transform_indices = @transform_5, window_bounds = array<i64: 1, 128>}, {transform_indices = @transform_6, window_bounds = array<i64: 1, 8, 128>}]} {
    %c0 = arith.constant 0 : index
    %c0_0 = arith.constant 0 : index
    %c0_1 = arith.constant 0 : index
    %0 = vector.load %arg1[%c0, %c0_0, %c0_1] : memref<1x8x32xf32, #tpu.memory_space<vmem>>, vector<1x8x32xf32>
    %1 = vector.shape_cast %0 : vector<1x8x32xf32> to vector<8x32xf32>
    %c0_2 = arith.constant 0 : index
    %c0_3 = arith.constant 0 : index
    %2 = vector.load %arg3[%c0_2, %c0_3] : memref<32x384xf32, #tpu.memory_space<vmem>>, vector<32x384xf32>
    %cst = arith.constant dense<0.000000e+00> : vector<8x384xf32>
    %3 = tpu.matmul %1, %2, %cst {dimension_numbers = #tpu.dot_dimension_numbers<[1], [0], [0], [1], [0, 0, 1, 1], [], []>} : vector<8x32xf32>, vector<32x384xf32>, vector<8x384xf32> -> vector<8x384xf32>
    %c0_4 = arith.constant 0 : index
    %c0_5 = arith.constant 0 : index
    %4 = vector.load %arg4[%c0_4, %c0_5] : memref<1x384xf32, #tpu.memory_space<vmem>>, vector<1x384xf32>
    %5 = vector.broadcast %4 : vector<1x384xf32> to vector<8x384xf32>
    %6 = arith.addf %3, %5 : vector<8x384xf32>
    %cst_6 = arith.constant 0.000000e+00 : f32
    %7 = vector.broadcast %cst_6 : f32 to vector<8x384xf32>
    %8 = arith.maximumf %6, %7 : vector<8x384xf32>
    %9 = vector.extract_strided_slice %8 {offsets = [0, 0], sizes = [8, 128], strides = [1, 1]} : vector<8x384xf32> to vector<8x128xf32>
    %10 = vector.shape_cast %9 : vector<8x128xf32> to vector<1x8x128xf32>
    %11 = vector.extract_strided_slice %8 {offsets = [0, 128], sizes = [8, 128], strides = [1, 1]} : vector<8x384xf32> to vector<8x128xf32>
    %12 = vector.shape_cast %11 : vector<8x128xf32> to vector<1x8x128xf32>
    %13 = vector.extract_strided_slice %8 {offsets = [0, 256], sizes = [8, 128], strides = [1, 1]} : vector<8x384xf32> to vector<8x128xf32>
    %14 = vector.shape_cast %13 : vector<8x128xf32> to vector<1x8x128xf32>
    %cst_7 = arith.constant dense<0.000000e+00> : vector<1x8x8xf32>
    %15 = tpu.matmul %10, %12, %cst_7 {dimension_numbers = #tpu.dot_dimension_numbers<[2], [2], [1], [1], [0, 0, 0, 1, 1, 1], [0], [0]>} : vector<1x8x128xf32>, vector<1x8x128xf32>, vector<1x8x8xf32> -> vector<1x8x8xf32>
    %c0_8 = arith.constant 0 : index
    %c0_9 = arith.constant 0 : index
    %c0_10 = arith.constant 0 : index
    %16 = vector.load %arg2[%c0_8, %c0_9, %c0_10] : memref<1x8x8xi8, #tpu.memory_space<vmem>>, vector<1x8x8xi8>
    %c0_i8 = arith.constant 0 : i8
    %17 = vector.broadcast %c0_i8 : i8 to vector<1x8x8xi8>
    %18 = arith.cmpi ne, %16, %17 : vector<1x8x8xi8>
    %cst_11 = arith.constant -9.000000e+15 : f32
    %19 = vector.broadcast %cst_11 : f32 to vector<1x8x8xf32>
    %20 = arith.select %18, %15, %19 : vector<1x8x8xi1>, vector<1x8x8xf32>
    %cst_12 = arith.constant dense<0xFF800000> : vector<1x8xf32>
    %21 = vector.multi_reduction <maximumf>, %20, %cst_12 [2] : vector<1x8x8xf32> to vector<1x8xf32>
    %22 = vector.shape_cast %21 : vector<1x8xf32> to vector<1x8x1xf32>
    %23 = vector.broadcast %22 : vector<1x8x1xf32> to vector<1x8x8xf32>
    %24 = arith.subf %20, %23 : vector<1x8x8xf32>
    %25 = math.exp %24 : vector<1x8x8xf32>
    %cst_13 = arith.constant dense<0.000000e+00> : vector<1x8xf32>
    %26 = vector.multi_reduction <add>, %25, %cst_13 [2] : vector<1x8x8xf32> to vector<1x8xf32>
    %27 = vector.shape_cast %26 : vector<1x8xf32> to vector<1x8x1xf32>
    %28 = tpu.reciprocal %27 : vector<1x8x1xf32> -> vector<1x8x1xf32>
    %29 = vector.broadcast %28 : vector<1x8x1xf32> to vector<1x8x8xf32>
    %30 = arith.mulf %25, %29 : vector<1x8x8xf32>
    %cst_14 = arith.constant dense<0.000000e+00> : vector<1x8x128xf32>
    %31 = tpu.matmul %30, %14, %cst_14 {dimension_numbers = #tpu.dot_dimension_numbers<[2], [1], [1], [2], [0, 0, 0, 1, 1, 2], [0], [0]>} : vector<1x8x8xf32>, vector<1x8x128xf32>, vector<1x8x128xf32> -> vector<1x8x128xf32>
    %32 = vector.shape_cast %31 : vector<1x8x128xf32> to vector<8x128xf32>
    %c0_15 = arith.constant 0 : index
    %c0_16 = arith.constant 0 : index
    %33 = vector.load %arg5[%c0_15, %c0_16] : memref<128x128xf32, #tpu.memory_space<vmem>>, vector<128x128xf32>
    %cst_17 = arith.constant dense<0.000000e+00> : vector<8x128xf32>
    %34 = tpu.matmul %32, %33, %cst_17 {dimension_numbers = #tpu.dot_dimension_numbers<[1], [0], [0], [1], [0, 0, 1, 1], [], []>} : vector<8x128xf32>, vector<128x128xf32>, vector<8x128xf32> -> vector<8x128xf32>
    %c0_18 = arith.constant 0 : index
    %c0_19 = arith.constant 0 : index
    %35 = vector.load %arg6[%c0_18, %c0_19] : memref<1x128xf32, #tpu.memory_space<vmem>>, vector<1x128xf32>
    %36 = vector.broadcast %35 : vector<1x128xf32> to vector<8x128xf32>
    %37 = arith.addf %34, %36 : vector<8x128xf32>
    %cst_20 = arith.constant 0.000000e+00 : f32
    %38 = vector.broadcast %cst_20 : f32 to vector<8x128xf32>
    %39 = arith.maximumf %37, %38 : vector<8x128xf32>
    %40 = vector.shape_cast %39 : vector<8x128xf32> to vector<1x8x128xf32>
    %c0_21 = arith.constant 0 : index
    %c0_22 = arith.constant 0 : index
    %c0_23 = arith.constant 0 : index
    %41 = vector.load %arg7[%c0_21, %c0_22, %c0_23] : memref<1x8x128xf32, #tpu.memory_space<vmem>>, vector<1x8x128xf32>
    tpu.vector_store %arg7[%c0_21, %c0_22, %c0_23], %40 {strides = array<i32>} : memref<1x8x128xf32, #tpu.memory_space<vmem>>, vector<1x8x128xf32>,
    return
  }
  func.func @transform_0(%arg0: i32) -> (i32, i32, i32) {
    %c0_i32 = arith.constant 0 : i32
    %c0_i32_0 = arith.constant 0 : i32
    %c0_i32_1 = arith.constant 0 : i32
    return %arg0, %c0_i32, %c0_i32_0 : i32, i32, i32
  }
  func.func @transform_1(%arg0: i32) -> (i32, i32, i32) {
    %c0_i32 = arith.constant 0 : i32
    %c0_i32_0 = arith.constant 0 : i32
    %c0_i32_1 = arith.constant 0 : i32
    return %arg0, %c0_i32, %c0_i32_0 : i32, i32, i32
  }
  func.func @transform_2(%arg0: i32) -> (i32, i32) {
    %c0_i32 = arith.constant 0 : i32
    %c0_i32_0 = arith.constant 0 : i32
    %c0_i32_1 = arith.constant 0 : i32
    return %c0_i32, %c0_i32_0 : i32, i32
  }
  func.func @transform_3(%arg0: i32) -> (i32, i32) {
    %c0_i32 = arith.constant 0 : i32
    %c0_i32_0 = arith.constant 0 : i32
    %c0_i32_1 = arith.constant 0 : i32
    return %c0_i32, %c0_i32_0 : i32, i32
  }
  func.func @transform_4(%arg0: i32) -> (i32, i32) {
    %c0_i32 = arith.constant 0 : i32
    %c0_i32_0 = arith.constant 0 : i32
    %c0_i32_1 = arith.constant 0 : i32
    return %c0_i32, %c0_i32_0 : i32, i32
  }
  func.func @transform_5(%arg0: i32) -> (i32, i32) {
    %c0_i32 = arith.constant 0 : i32
    %c0_i32_0 = arith.constant 0 : i32
    %c0_i32_1 = arith.constant 0 : i32
    return %c0_i32, %c0_i32_0 : i32, i32
  }
  func.func @transform_6(%arg0: i32) -> (i32, i32, i32) {
    %c0_i32 = arith.constant 0 : i32
    %c0_i32_0 = arith.constant 0 : i32
    %c0_i32_1 = arith.constant 0 : i32
    return %arg0, %c0_i32, %c0_i32_0 : i32, i32, i32
  }
}

</mosaic_0001>

<bundles_post_ra>
// kernel: tpu_custom_call.1
= control target key start
LH: loop header
LB: loop body
LE: loop exit
PB: predicated region body
PF: predicated region fallthrough
CT: control target
= control target key end

     0   :  { %s1296_s0 = inlined_call_operand.hbm [shape: f32[2,8,32], index: 0, kind: input, shape index: {}]   ;;  %s1297_s1 = inlined_call_operand.hbm [shape: s8[2,8,8], index: 1, kind: input, shape index: {}]   ;;  %s1298_s2 = inlined_call_operand.hbm [shape: f32[32,384], index: 2, kind: input, shape index: {}]   ;;  %s1299_s3 = inlined_call_operand.hbm [shape: f32[1,384], index: 3, kind: input, shape index: {}]   ;;  %s1300_s4 = inlined_call_operand.hbm [shape: f32[128,128], index: 4, kind: input, shape index: {}]   ;;  %s1301_s5 = inlined_call_operand.vmem [shape: f32[1,128], index: 5, kind: input, shape index: {}]   ;;  %s1302_s6 = inlined_call_operand.hbm [shape: f32[2,8,128], index: 6, kind: output, shape index: {}]  }
   0x1   :  { %1304 = sst [smem:[#allocation19_spill]] %s1298_s2 }
   0x2   :  { %1305 = sst [smem:[#allocation20_spill]] %s1299_s3 }
   0x3   :  { %1306 = sst [smem:[#allocation21_spill]] %s1300_s4 }
   0x4   :  { %11 = vsyncpa [#allocation3], 0 }
   0x5   :  { %13 = vsyncpa [#allocation3 + $0x1], 0 }
   0x6   :  { %14 = vsyncpa [#allocation6], 0 }
   0x7   :  { %16 = vsyncpa [#allocation6 + $0x1], 0 }
   0x8   :  { %17 = vsyncpa [#allocation9], 0 }
   0x9   :  { %18 = vsyncpa [#allocation4], 0 }
   0xa   :  { %20 = vsyncpa [#allocation4 + $0x1], 0  ;;  %s1088_s21 = smov 0   ;;  %s1090_s22 = smov 0  }
   0xb   :  { %s1092_s23 = smov 0   ;;  %s1094_s24 = smov 0  }
   0xc LB: > { %1307 = sst [smem:[#allocation17_spill]] %s1039_s23  ;;  %s1112_s28 = sadd.s32 4294967295, %s1043_s24   ;;  %s1043_s24 = sphi %s1094_s24, %s1324_s24   ;;  %s1039_s23 = sphi %s1092_s23, %s1321_s23   ;;  %s1035_s22 = sphi %s1090_s22, %s1323_s22   ;;  %s1031_s21 = sphi %s1088_s21, %s1322_s21  }
   0xd   : > { %s1308_s2 = sld [smem:[#allocation19_spill]]  ;;  %p699_p0 = scmp.ge.s32.totalorder %s1043_s24, 1 }
   0xe   : > { %p47_p1 = scmp.eq.s32.totalorder %s1112_s28, 0  ;;  %p193_p2 = scmp.lt.s32.totalorder %s1043_s24, 3 }
   0xf   : > { %s1045_s30 = smov [#allocation7]   ;;  %s1310_s3 = sld [smem:[#allocation20_spill]] }
  0x10   : > { %p1117_p3 = pnand %p699_p0, %p193_p2  ;;  %s206_s7 = sshll.u32 %s1045_s30, 4  ;;  %s207_s7 = int_to_ptr.vmem [resolvable:$true] %s206_s7 }
  0x11   : > { %s1312_s4 = sld [smem:[#allocation21_spill]]  ;;  %s1046_s15 = smov [#allocation8]  }
  0x12   : > { %p741_p4 = pneg %p1117_p3  ;;  %s221_s16 = sshll.u32 %s1046_s15, 4  ;;  %s222_s16 = int_to_ptr.vmem [resolvable:$true] %s221_s16 }
  0x13   : > { %s204_s27 = sshll.u32 %s1308_s2, 4  ;;  %s1047_s17 = smov 384   ;;  %s205_s27 = int_to_ptr.hbm [resolvable:$true] %s204_s27 }
  0x14   : > { %p1129_p6 = pnand %p741_p4, %p47_p1  ;;  %s1048_s18 = smov 24  }
  0x15   : > { %s219_s10 = sshll.u32 %s1310_s3, 4  ;;  %s1049_s19 = smov [#allocation10]   ;;  %s220_s10 = int_to_ptr.hbm [resolvable:$true] %s219_s10 }
  0x16   : > { %744 = dma.hbm_to_vmem [thread:$0]  (!%p1129_p6), %s205_s27, 1536, %s207_s7, [#allocation6], %s1047_s17, %s1047_s17, %s1048_s18  }
  0x17   : > { %s230_s14 = sshll.u32 %s1312_s4, 4  ;;  %s232_s20 = sshll.u32 %s1049_s19, 4  ;;  %s231_s14 = int_to_ptr.hbm [resolvable:$true] %s230_s14  ;;  %s233_s20 = int_to_ptr.vmem [resolvable:$true] %s232_s20 }
  0x18   : > { %747 = dma.hbm_to_vmem [thread:$0]  (!%p1129_p6), %s220_s10, 48, %s222_s16, [#allocation9]  }
  0x19   : > { %s1050_s25 = smov 128   ;;  %s1051_s26 = smov 8  }
  0x1a   : > { %750 = dma.hbm_to_vmem [thread:$0]  (!%p1129_p6), %s231_s14, 2048, %s233_s20, [#allocation9], %s1050_s25, %s1050_s25, %s1051_s26  }
  0x1b   : > { %s698_s27 = sadd.s32 4294967294, %s1043_s24   ;;  %s1144_s30 = sadd.s32 1, %s1043_s24  }
  0x1c   : > { %s33_s7 = sadd.s32 1, %s1039_s23  ;;  %s30_s8 = ssub.s32 %s1043_s24, %s1144_s30 }
  0x1d   : > { %p40_p7 = scmp.ne.s32.totalorder %s1039_s23, %s1035_s22  ;;  %p31_p8 = scmp.eq.s32.totalorder %s30_s8, 0 }
  0x1e   : > { %p41_p9 = scmp.eq.s32.totalorder %s1043_s24, 0  ;;  %p46_p10 = scmp.ne.s32.totalorder %s1035_s22, %s1031_s21 }
  0x1f   : > { %p180_p11 = scmp.eq.s32.totalorder %s1112_s28, 1  ;;  %p186_p2 = scmp.eq.s32.totalorder %s698_s27, 1 }
  0x20   : > { %s1156_s9 = scalar_select %p31_p8, %s1039_s23, %s33_s7  }
  0x21   : > { %p1158_p12 = por %p41_p9, %p40_p7  ;;  %p1164_p13 = por %p47_p1, %p46_p10 }
  0x22   : > { %1313 = sst [smem:[#allocation18_spill]] %s1156_s9  ;;  %p1168_p0 = por %p180_p11, %p40_p7 }
  0x23   : > { %p765_p4 = scmp.lt.s32.totalorder %s1043_s24, 2  ;;  %s1174_s13 = sand.u32 1, %s1039_s23  }
  0x24   : > { %p1176_p6 = por %p186_p2, %p46_p10  ;;  %s704_s15 = sshll.u32 %s1174_s13, 3 }
  0x25   : > { %s705_s16 = sshll.u32 %s1043_s24, 3  ;;  %s253_s25 = scalar_lea.vmem [#allocation2], %s704_s15 }
  0x26   : > { %s257_s19 = scalar_lea.hbm %s1296_s0, %s705_s16  ;;  %s261_s26 = sshll.u32 %s253_s25, 4  ;;  %s262_s26 = int_to_ptr.vmem [resolvable:$true] %s261_s26 }
  0x27   : > { %s259_s20 = sshll.u32 %s257_s19, 4  ;;  %p1187_p7 = pnand %p765_p4, %p1158_p12  ;;  %s260_s20 = int_to_ptr.hbm [resolvable:$true] %s259_s20 }
  0x28   : > { %s268_s7 = sand.u32 1, %s1043_s24   ;;  %s706_s8 = sshll.u32 %s1174_s13, 1 }
  0x29   : > { %s250_s2 = scalar_lea.sflag [#allocation3], %s1174_s13  ;;  %s905_s3 = sshra.s32 %s260_s20, 4  ;;  %s906_s3 = int_to_ptr.hbm [resolvable:$true] %s905_s3 }
  0x2a   : > { %s907_s4 = scalar_lea.hbm %s906_s3, 8  ;;  %p909_p9 = pneg %p1187_p7 }
  0x2b   : > { %p908_p8 = scmp.ne.s32.totalorder %s906_s3, %s907_s4  ;;  %s912_s16 = scalar_lea.hbm %s1296_s0, 16 }
  0x2c   : > { %p913_p12 = scmp.lt.s32.totalorder %s906_s3, %s1296_s0  ;;  %p914_p2 = scmp.lt.s32.totalorder %s912_s16, %s907_s4 }
  0x2d   : > { %p910_p10 = pnand %p909_p9, %p908_p8 }
  0x2e   : > { %p915_p4 = por %p914_p2, %p913_p12 }
  0x2f   : > { %p911_p11 = pneg %p910_p10 }
  0x31   : > { %p916_p5 = pnand %p915_p4, %p911_p11 }
  0x33   : > { %919 = shalt.err (!%p916_p5)
}
  0x34   : > { %754 = dma.hbm_to_vmem [thread:$0]  (!%p1187_p7), %s260_s20, 128, %s262_s26, %s250_s2  }
  0x35   : > { %s707_s13 = sshll.u32 %s1043_s24, 1  ;;  %s272_s19 = scalar_lea.vmem [#allocation5], %s706_s8 }
  0x36   : > { %s280_s25 = sshll.u32 %s272_s19, 4  ;;  %s276_s10 = scalar_lea.hbm %s1297_s1, %s707_s13  ;;  %s281_s25 = int_to_ptr.vmem [resolvable:$true] %s280_s25 }
  0x37   : > { %s278_s15 = sshll.u32 %s276_s10, 4  ;;  %s269_s3 = scalar_lea.sflag [#allocation6], %s268_s7  ;;  %s279_s15 = int_to_ptr.hbm [resolvable:$true] %s278_s15 }
  0x38   : > { %s935_s4 = sshra.s32 %s279_s15, 4  ;;  %s942_s26 = scalar_lea.hbm %s1297_s1, 4  ;;  %s936_s4 = int_to_ptr.hbm [resolvable:$true] %s935_s4 }
  0x39   : > { %s937_s16 = scalar_lea.hbm %s936_s4, 2  ;;  %p943_p11 = scmp.lt.s32.totalorder %s936_s4, %s1297_s1 }
  0x3a   : > { %p938_p5 = scmp.ne.s32.totalorder %s936_s4, %s937_s16  ;;  %p944_p12 = scmp.lt.s32.totalorder %s942_s26, %s937_s16 }
  0x3c   : > { %p940_p8 = pnand %p938_p5, %p909_p9  ;;  %p945_p2 = por %p944_p12, %p943_p11 }
  0x3e   : > { %p941_p10 = pneg %p940_p8 }
  0x40   : > { %p946_p4 = pnand %p945_p2, %p941_p10 }
  0x42   : > { %949 = shalt.err (!%p946_p4)
}
  0x43   : > { %757 = dma.hbm_to_vmem [thread:$0]  (!%p1187_p7), %s279_s15, 32, %s281_s25, %s269_s3  }
  0x44   : > { %289 = sbr.rel (%p1117_p3) target bundleno = 892 (0x37c), region = 44  ;;  %s1225_s23 = sand.u32 (!%p1117_p3), 1, %s1035_s22  }
  0x45   : > { %s709_s9 = sshll.u32 (!%p1117_p3), %s1225_s23, 3  ;;  %s292_s7 = scalar_lea.sflag (!%p1117_p3), [#allocation3], %s1225_s23 }
  0x46   : > { %s295_s18 = scalar_lea.vmem (!%p1117_p3), [#allocation2], %s709_s9 }
  0x49   : > { %1010 = dma.done.wait (%p1164_p13), %s292_s7, 128  }
  0x4a   : > { %1012 = vsyncadd (%p1164_p13), %s292_s7, 4294967168  ;;  %s301_s29 = sand.u32 1, %s1112_s28   ;;  %s710_s27 = sshll.u32 %s1225_s23, 1 }
  0x4b   : > { %s302_s13 = scalar_lea.sflag [#allocation6], %s301_s29  ;;  %s1237_s19 = scalar_lea.vmem [#allocation5], %s710_s27 }
  0x4c   : > { %1014 = dma.done.wait (%p1164_p13), %s302_s13, 32  }
  0x4d   : > { %1016 = vsyncadd (%p1164_p13), %s302_s13, 4294967264 }
  0x4e   : > { %1018 = dma.done.wait (%p47_p1), [#allocation6], 1536  }
  0x4f   : > { %1020 = vsyncadd (%p47_p1), [#allocation6], 4294965760 }
  0x50   : > { %1022 = dma.done.wait (%p47_p1), [#allocation9], 2096  }
  0x51   : > { %1024 = vsyncadd (%p47_p1), [#allocation9], 4294965200  ;;  %v367_v0 = vld [vmem:[#allocation7 + $0x48] sm:$0xff]  ;;  %v364_v1 = vld [vmem:[#allocation7 + $0x30] sm:$0xff]  ;;  %vm378_vm0 = vcmask 261120   ;;  %v1052_v21 = vmov 0  }
  0x52   : > { %394 = vmatpush.msra.mxu1 %v367_v0  ;;  %v361_v2 = vld [vmem:[#allocation7 + $0x18] sm:$0xff]  ;;  %v358_v3 = vld [vmem:[#allocation7] sm:$0xff]  ;;  %v368_v5 = vld [vmem:[#allocation7 + $0x50] sm:$0xff]  ;;  %vm471_vm3 = vcmask 64512   ;;  %s720_s11 = sshll.u32 %s1112_s28, 3  ;;  %s354_s16 = scalar_lea.vmem [#allocation11], %s709_s9 }
  0x53   : > { %v357_v4 = vld [vmem:[%s295_s18] sm:$0xff]  ;;  %v362_v7 = vld [vmem:[#allocation7 + $0x20] sm:$0xff]  ;;  %v465_v20 = vld [vmem:[%s1237_s19] sm:$0x3]  ;;  %s572_s4 = scalar_lea.hbm %s1302_s6, %s720_s11  ;;  %s574_s2 = sshll.u32 %s354_s16, 4  ;;  %s575_s2 = int_to_ptr.vmem [resolvable:$true] %s574_s2 }
  0x54   : > { %395 = vmatpush.msra.mxu1 %v364_v1  ;;  %v365_v6 = vld [vmem:[#allocation7 + $0x38] sm:$0xff]  ;;  %v359_v8 = vld [vmem:[#allocation7 + $0x8] sm:$0xff]  ;;  %v370_v10 = vld [vmem:[#allocation8] sm:$0x7]  ;;  %vm466_vm1 = vnez %v465_v20  ;;  %s576_s20 = sshll.u32 %s572_s4, 4  ;;  %s562_s28 = scalar_lea.sflag [#allocation4], %s1225_s23  ;;  %s577_s20 = int_to_ptr.hbm [resolvable:$true] %s576_s20 }
  0x55   : > { %v373_v11 = vperm.slane %v370_v10, 1  ;;  %v372_v12 = vperm.slane %v370_v10, 0  ;;  %v369_v18 = vld [vmem:[#allocation7 + $0x58] sm:$0xff]  ;;  %v366_v19 = vld [vmem:[#allocation7 + $0x40] sm:$0xff]  ;;  %v467_v22 = vsel %vm466_vm1, 16843009, %v1052_v21 }
  0x56   : > { %396 = vmatpush.msra.mxu1 %v361_v2  ;;  %434 = vmatpush.msra.mxu2 %v369_v18  ;;  %v468_v23 = vunpack.c.0.s8 %v467_v22  ;;  %v363_v27 = vld [vmem:[#allocation7 + $0x28] sm:$0xff]  ;;  %v360_v28 = vld [vmem:[#allocation7 + $0x10] sm:$0xff]  ;;  %v374_v34 = vperm.slane %v370_v10, 2  ;;  %v534_v38 = vld [vmem:[#allocation10 + $0x78] sm:$0xff]  ;;  %s979_s26 = sshra.s32 %s577_s20, 4  ;;  %s985_s18 = scalar_lea.hbm %s1302_s6, 16  ;;  %s980_s26 = int_to_ptr.hbm [resolvable:$true] %s979_s26 }
  0x57   : > { %v533_v39 = vld [vmem:[#allocation10 + $0x70] sm:$0xff]  ;;  %539 = vmatpush.msra.mxu0 %v534_v38  ;;  %v532_v40 = vld [vmem:[#allocation10 + $0x68] sm:$0xff]  ;;  %v531_v41 = vld [vmem:[#allocation10 + $0x60] sm:$0xff]  ;;  %s981_s8 = scalar_lea.hbm %s980_s26, 8  ;;  %p986_p7 = scmp.lt.s32.totalorder %s980_s26, %s1302_s6 }
  0x58   : > { %397 = vmatpush.msra.mxu1 %v358_v3  ;;  %435 = vmatpush.msra.mxu2 %v366_v19  ;;  %vm469_vm2 = vcmp.ne.s32.totalorder %v468_v23, 0  ;;  %v530_v42 = vld [vmem:[#allocation10 + $0x58] sm:$0xff]  ;;  %v529_v43 = vld [vmem:[#allocation10 + $0x50] sm:$0xff]  ;;  %v528_v44 = vld [vmem:[#allocation10 + $0x48] sm:$0xff]  ;;  %p982_p1 = scmp.ne.s32.totalorder %s980_s26, %s981_s8  ;;  %p987_p9 = scmp.lt.s32.totalorder %s985_s18, %s981_s8 }
  0x59   : > { %715 = vmatmul.msk.f32.vlgmr.msra.gmra.mxu1 %vm378_vm0, %v357_v4  ;;  %540 = vmatpush.msra.mxu0 %v533_v39  ;;  %v527_v46 = vld [vmem:[#allocation10 + $0x40] sm:$0xff]  ;;  %v526_v47 = vld [vmem:[#allocation10 + $0x38] sm:$0xff]  ;;  %v525_v48 = vld [vmem:[#allocation10 + $0x30] sm:$0xff] }
  0x5a   : > { %414 = vmatpush.msrb.mxu1 %v368_v5  ;;  %436 = vmatpush.msra.mxu2 %v363_v27  ;;  %v524_v49 = vld [vmem:[#allocation10 + $0x28] sm:$0xff]  ;;  %v523_v52 = vld [vmem:[#allocation10 + $0x20] sm:$0xff]  ;;  %v522_v54 = vld [vmem:[#allocation10 + $0x18] sm:$0xff]  ;;  %p983_p3 = pnand %p982_p1, %p1168_p0  ;;  %p988_p5 = por %p987_p9, %p986_p7 }
  0x5b   : > { %541 = vmatpush.msra.mxu0 %v532_v40  ;;  %v521_v58 = vld [vmem:[#allocation10 + $0x10] sm:$0xff]  ;;  %v520_v60 = vld [vmem:[#allocation10 + $0x8] sm:$0xff]  ;;  %v519_v1 = vld [vmem:[#allocation10] sm:$0xff] }
  0x5c   : > { %415 = vmatpush.msrb.mxu1 %v365_v6  ;;  %437 = vmatpush.msra.mxu2 %v360_v28  ;;  %v810_v3 = vld [vmem:[%s1301_s5] ss:$0 sm:$0xff]  ;;  %p984_p13 = pneg %p983_p3 }
  0x5d   : > { %717 = vmatmul.msk.f32.vlgmr.msra.gmra.mxu2 %vm378_vm0, %v357_v4  ;;  %542 = vmatpush.msra.mxu0 %v531_v41 }
  0x5e   : > { %416 = vmatpush.msrb.mxu1 %v362_v7  ;;  %p989_p8 = pnand %p988_p5, %p984_p13 }
  0x5f   : > { %543 = vmatpush.msra.mxu0 %v530_v42 }
  0x60   : > { %417 = vmatpush.msrb.mxu1 %v359_v8 }
  0x61   : > { %716 = vmatmul.msk.f32.vlgmr.msrb.gmra.mxu1 %vm378_vm0, %v357_v4  ;;  %544 = vmatpush.msra.mxu0 %v529_v43 }
  0x63   : > { %545 = vmatpush.msra.mxu0 %v528_v44 }
  0x65   : > { %546 = vmatpush.msra.mxu0 %v527_v46 }
  0x67   : > { %547 = vmatpush.msra.mxu0 %v526_v47 }
  0x69   : > { %548 = vmatpush.msra.mxu0 %v525_v48 }
  0x6b   : > { %549 = vmatpush.msra.mxu0 %v524_v49 }
  0x6d   : > { %550 = vmatpush.msra.mxu0 %v523_v52 }
  0x6f   : > { %551 = vmatpush.msra.mxu0 %v522_v54 }
  0x71   : > { %552 = vmatpush.msra.mxu0 %v521_v58 }
  0x73   : > { %553 = vmatpush.msra.mxu0 %v520_v60 }
  0x75   : > { %554 = vmatpush.msra.mxu0 %v519_v1 }
  0xd6   : > { %v399_v9 = vpop.f32.mrf.mxu1 }
  0xd7   : > { %v400_v15 = vadd.f32 %v399_v9, %v372_v12 }
  0xd9   : > { %v442_v17 = vmax.f32 %v400_v15, 0.0 }
  0xde   : > { %v419_v13 = vpop.f32.mrf.mxu1 }
  0xdf   : > { %v420_v14 = vadd.f32 %v419_v13, %v373_v11 }
  0xe0   : > { %v439_v35 = vpop.f32.mrf.mxu2 }
  0xe1   : > { %v443_v16 = vmax.f32 %v420_v14, 0.0  ;;  %v440_v36 = vadd.f32 %v439_v35, %v374_v34 }
  0xe3   : > { %460 = vmatpush.xpose.msra.mxu3 %v443_v16  ;;  %v444_v37 = vmax.f32 %v440_v36, 0.0 }
  0xe6   : > { %461 = vmatmul.f32.vlgmr.msra.gmra.mxu3 %v442_v17 }
  0xe7   : > { %514 = vmatpush.msrb.mxu3 %v444_v37 }
 0x169   : > { %v462_v24 = vpop.f32.mrf.mxu3 }
 0x16a   : > { %v470_v25 = vsel %vm469_vm2, %v462_v24, -9e+15 }
 0x16b   : > { %v472_v26 = vsel %vm471_vm3, %v470_v25, -inf }
 0x16c   : > { %473 = vmax.xlane.f32.xlu0 %v472_v26 }
 0x1df   : > { %v474_v29 = vpop.xlane.xlu0 %473 }
 0x1e0   : > { %v475_v30 = vsub.f32 %v470_v25, %v474_v29 }
 0x1e2   : > { %v476_v31 = vmul.f32 1.442695, %v475_v30 }
 0x1e4   : > { %811 = vpow2.f32 %v476_v31 }
 0x1ea   : > { %v812_v32 = vpop.eup %811 }
 0x1eb   : > { %v478_v33 = vsel %vm471_vm3, %v812_v32, 0.0 }
 0x1ec   : > { %479 = vadd.xlane.f32.xlu0 %v478_v33 }
 0x25f   : > { %v480_v45 = vpop.xlane.xlu0 %479 }
 0x260   : > { %813 = vrcp.f32 %v480_v45  ;;  %v492_v55 = vand.u32 2147483648, %v480_v45  ;;  %v490_v57 = vand.u32 2147483647, %v480_v45  ;;  %vm486_vm5 = vweird.f32 %v480_v45 }
 0x262   : > { %v493_v61 = vor.u32 1.1754944e-38, %v492_v55  ;;  %vm491_vm7 = vcmp.eq.f32.partialorder %v490_v57, 8.507059e+37 }
 0x266   : > { %v814_v50 = vpop.eup %813 }
 0x267   : > { %v482_v51 = vmul.f32 %v814_v50, %v480_v45  ;;  %vm487_vm4 = vweird.f32 %v814_v50 }
 0x268   : > { %vm488_vm6 = vmor %vm486_vm5, %vm487_vm4 }
 0x269   : > { %v483_v53 = vsub.f32 1.0, %v482_v51 }
 0x26b   : > { %v484_v56 = vmul.f32 %v814_v50, %v483_v53 }
 0x26d   : > { %v485_v59 = vadd.f32 %v814_v50, %v484_v56 }
 0x26f   : > { %v489_v62 = vsel %vm488_vm6, %v814_v50, %v485_v59 }
 0x270   : > { %v494_v63 = vsel %vm491_vm7, %v493_v61, %v489_v62 }
 0x271   : > { %v495_v0 = vmul.f32 %v812_v32, %v494_v63 }
 0x273   : > { %718 = vmatmul.msk.f32.vlgmr.msrb.gmra.mxu3 %vm471_vm3, %v495_v0 }
 0x2f6   : > { %v516_v2 = vpop.f32.mrf.mxu3 }
 0x2f7   : > { %555 = vmatmul.f32.vlgmr.msra.gmra.mxu0 %v516_v2 }
 0x374   : > { %v556_v4 = vpop.f32.mrf.mxu0 }
 0x375   : > { %v557_v5 = vadd.f32 %v810_v3, %v556_v4 }
 0x377   : > { %v559_v6 = vmax.f32 %v557_v5, 0.0 }
 0x379   : > { %560 = vst [vmem:[%s354_s16] sm:$0xff] %v559_v6 }
 0x37a   : > { %992 = shalt.err (!%p989_p8)
}
 0x37b   : > { %739 = dma.vmem_to_hbm [thread:$0]  (%p1168_p0), %s575_s2, 128, %s577_s20, %s562_s28  }
 0x37c PF: > { %s588_s23 = sand.u32 1, %s1031_s21   ;;  %p1319_p10 = scmp.ge.s32.totalorder %s1043_s24, 2 }
 0x37d   : > { %s589_s27 = scalar_lea.sflag [#allocation4], %s588_s23 }
 0x37e   : > { %p759_p11 = pnand %p1319_p10, %p1176_p6 }
 0x380   : > { %p760_p12 = pneg %p759_p11 }
 0x382   : > { %1026 = dma.done.wait (%p760_p12), %s589_s27, 128  }
 0x383   : > { %1028 = vsyncadd (%p760_p12), %s589_s27, 4294967168  ;;  %s1320_s13 = sld [smem:[#allocation17_spill]]  ;;  %p23_p2 = scmp.ge.s32.totalorder %s1144_s30, 4  }
 0x384   : > { %s1321_s23 = sld [smem:[#allocation18_spill]]  ;;  %s1322_s21 = smov %s1035_s22 }
 0x385   : > { %s1324_s24 = smov %s1144_s30  ;;  %25 = sbr.rel (!%p23_p2) target bundleno = 12 (0xc), region = 114 }
 0x389   : > { %s1323_s22 = smov %s1320_s13 }
 0x38a   :  { %595 = vsyncpa [#allocation3], 1 }
 0x38b   :  { %597 = vsyncpa [#allocation3 + $0x1], 1 }
 0x38c   :  { %598 = vsyncpa [#allocation6], 1 }
 0x38d   :  { %600 = vsyncpa [#allocation6 + $0x1], 1 }
 0x38e   :  { %601 = vsyncpa [#allocation9], 1 }
 0x38f   :  { %602 = vsyncpa [#allocation4], 1 }
 0x390   :  { %604 = vsyncpa [#allocation4 + $0x1], 1 }

// kernel: tpu_custom_call.1
= control target key start
LH: loop header
LB: loop body
LE: loop exit
PB: predicated region body
PF: predicated region fallthrough
CT: control target
= control target key end

     0   :  { %s1296_s0 = inlined_call_operand.hbm [shape: f32[2,8,32], index: 0, kind: input, shape index: {}]   ;;  %s1297_s1 = inlined_call_operand.hbm [shape: s8[2,8,8], index: 1, kind: input, shape index: {}]   ;;  %s1298_s2 = inlined_call_operand.hbm [shape: f32[32,384], index: 2, kind: input, shape index: {}]   ;;  %s1299_s3 = inlined_call_operand.hbm [shape: f32[1,384], index: 3, kind: input, shape index: {}]   ;;  %s1300_s4 = inlined_call_operand.hbm [shape: f32[128,128], index: 4, kind: input, shape index: {}]   ;;  %s1301_s5 = inlined_call_operand.vmem [shape: f32[1,128], index: 5, kind: input, shape index: {}]   ;;  %s1302_s6 = inlined_call_operand.hbm [shape: f32[2,8,128], index: 6, kind: output, shape index: {}]  }
   0x1   :  { %1304 = sst [smem:[#allocation19_spill]] %s1298_s2 }
   0x2   :  { %1305 = sst [smem:[#allocation20_spill]] %s1299_s3 }
   0x3   :  { %1306 = sst [smem:[#allocation21_spill]] %s1300_s4 }
   0x4   :  { %11 = vsyncpa [#allocation3], 0 }
   0x5   :  { %13 = vsyncpa [#allocation3 + $0x1], 0 }
   0x6   :  { %14 = vsyncpa [#allocation6], 0 }
   0x7   :  { %16 = vsyncpa [#allocation6 + $0x1], 0 }
   0x8   :  { %17 = vsyncpa [#allocation9], 0 }
   0x9   :  { %18 = vsyncpa [#allocation4], 0 }
   0xa   :  { %20 = vsyncpa [#allocation4 + $0x1], 0  ;;  %s1088_s21 = smov 0   ;;  %s1090_s22 = smov 0  }
   0xb   :  { %s1092_s23 = smov 0   ;;  %s1094_s24 = smov 0  }
   0xc LB: > { %1307 = sst [smem:[#allocation17_spill]] %s1039_s23  ;;  %s1112_s28 = sadd.s32 4294967295, %s1043_s24   ;;  %s1043_s24 = sphi %s1094_s24, %s1324_s24   ;;  %s1039_s23 = sphi %s1092_s23, %s1321_s23   ;;  %s1035_s22 = sphi %s1090_s22, %s1323_s22   ;;  %s1031_s21 = sphi %s1088_s21, %s1322_s21  }
   0xd   : > { %s1308_s2 = sld [smem:[#allocation19_spill]]  ;;  %p699_p0 = scmp.ge.s32.totalorder %s1043_s24, 1 }
   0xe   : > { %p47_p1 = scmp.eq.s32.totalorder %s1112_s28, 0  ;;  %p193_p2 = scmp.lt.s32.totalorder %s1043_s24, 3 }
   0xf   : > { %s1045_s30 = smov [#allocation7]   ;;  %s1310_s3 = sld [smem:[#allocation20_spill]] }
  0x10   : > { %p1117_p3 = pnand %p699_p0, %p193_p2  ;;  %s206_s7 = sshll.u32 %s1045_s30, 4  ;;  %s207_s7 = int_to_ptr.vmem [resolvable:$true] %s206_s7 }
  0x11   : > { %s1312_s4 = sld [smem:[#allocation21_spill]]  ;;  %s1046_s15 = smov [#allocation8]  }
  0x12   : > { %p741_p4 = pneg %p1117_p3  ;;  %s221_s16 = sshll.u32 %s1046_s15, 4  ;;  %s222_s16 = int_to_ptr.vmem [resolvable:$true] %s221_s16 }
  0x13   : > { %s204_s27 = sshll.u32 %s1308_s2, 4  ;;  %s1047_s17 = smov 384   ;;  %s205_s27 = int_to_ptr.hbm [resolvable:$true] %s204_s27 }
  0x14   : > { %p1129_p6 = pnand %p741_p4, %p47_p1  ;;  %s1048_s18 = smov 24  }
  0x15   : > { %s219_s10 = sshll.u32 %s1310_s3, 4  ;;  %s1049_s19 = smov [#allocation10]   ;;  %s220_s10 = int_to_ptr.hbm [resolvable:$true] %s219_s10 }
  0x16   : > { %744 = dma.hbm_to_vmem [thread:$0]  (!%p1129_p6), %s205_s27, 1536, %s207_s7, [#allocation6], %s1047_s17, %s1047_s17, %s1048_s18  }
  0x17   : > { %s230_s14 = sshll.u32 %s1312_s4, 4  ;;  %s232_s20 = sshll.u32 %s1049_s19, 4  ;;  %s231_s14 = int_to_ptr.hbm [resolvable:$true] %s230_s14  ;;  %s233_s20 = int_to_ptr.vmem [resolvable:$true] %s232_s20 }
  0x18   : > { %747 = dma.hbm_to_vmem [thread:$0]  (!%p1129_p6), %s220_s10, 48, %s222_s16, [#allocation9]  }
  0x19   : > { %s1050_s25 = smov 128   ;;  %s1051_s26 = smov 8  }
  0x1a   : > { %750 = dma.hbm_to_vmem [thread:$0]  (!%p1129_p6), %s231_s14, 2048, %s233_s20, [#allocation9], %s1050_s25, %s1050_s25, %s1051_s26  }
  0x1b   : > { %s698_s27 = sadd.s32 4294967294, %s1043_s24   ;;  %s1144_s30 = sadd.s32 1, %s1043_s24  }
  0x1c   : > { %s33_s7 = sadd.s32 1, %s1039_s23  ;;  %s30_s8 = ssub.s32 %s1043_s24, %s1144_s30 }
  0x1d   : > { %p40_p7 = scmp.ne.s32.totalorder %s1039_s23, %s1035_s22  ;;  %p31_p8 = scmp.eq.s32.totalorder %s30_s8, 0 }
  0x1e   : > { %p41_p9 = scmp.eq.s32.totalorder %s1043_s24, 0  ;;  %p46_p10 = scmp.ne.s32.totalorder %s1035_s22, %s1031_s21 }
  0x1f   : > { %p180_p11 = scmp.eq.s32.totalorder %s1112_s28, 1  ;;  %p186_p2 = scmp.eq.s32.totalorder %s698_s27, 1 }
  0x20   : > { %s1156_s9 = scalar_select %p31_p8, %s1039_s23, %s33_s7  }
  0x21   : > { %p1158_p12 = por %p41_p9, %p40_p7  ;;  %p1164_p13 = por %p47_p1, %p46_p10 }
  0x22   : > { %1313 = sst [smem:[#allocation18_spill]] %s1156_s9  ;;  %p1168_p0 = por %p180_p11, %p40_p7 }
  0x23   : > { %p765_p4 = scmp.lt.s32.totalorder %s1043_s24, 2  ;;  %s1174_s13 = sand.u32 1, %s1039_s23  }
  0x24   : > { %p1176_p6 = por %p186_p2, %p46_p10  ;;  %s704_s15 = sshll.u32 %s1174_s13, 3 }
  0x25   : > { %s705_s16 = sshll.u32 %s1043_s24, 3  ;;  %s253_s25 = scalar_lea.vmem [#allocation2], %s704_s15 }
  0x26   : > { %s257_s19 = scalar_lea.hbm %s1296_s0, %s705_s16  ;;  %s261_s26 = sshll.u32 %s253_s25, 4  ;;  %s262_s26 = int_to_ptr.vmem [resolvable:$true] %s261_s26 }
  0x27   : > { %s259_s20 = sshll.u32 %s257_s19, 4  ;;  %p1187_p7 = pnand %p765_p4, %p1158_p12  ;;  %s260_s20 = int_to_ptr.hbm [resolvable:$true] %s259_s20 }
  0x28   : > { %s268_s7 = sand.u32 1, %s1043_s24   ;;  %s706_s8 = sshll.u32 %s1174_s13, 1 }
  0x29   : > { %s250_s2 = scalar_lea.sflag [#allocation3], %s1174_s13  ;;  %s905_s3 = sshra.s32 %s260_s20, 4  ;;  %s906_s3 = int_to_ptr.hbm [resolvable:$true] %s905_s3 }
  0x2a   : > { %s907_s4 = scalar_lea.hbm %s906_s3, 8  ;;  %p909_p9 = pneg %p1187_p7 }
  0x2b   : > { %p908_p8 = scmp.ne.s32.totalorder %s906_s3, %s907_s4  ;;  %s912_s16 = scalar_lea.hbm %s1296_s0, 16 }
  0x2c   : > { %p913_p12 = scmp.lt.s32.totalorder %s906_s3, %s1296_s0  ;;  %p914_p2 = scmp.lt.s32.totalorder %s912_s16, %s907_s4 }
  0x2d   : > { %p910_p10 = pnand %p909_p9, %p908_p8 }
  0x2e   : > { %p915_p4 = por %p914_p2, %p913_p12 }
  0x2f   : > { %p911_p11 = pneg %p910_p10 }
  0x31   : > { %p916_p5 = pnand %p915_p4, %p911_p11 }
  0x33   : > { %919 = shalt.err (!%p916_p5)
}
  0x34   : > { %754 = dma.hbm_to_vmem [thread:$0]  (!%p1187_p7), %s260_s20, 128, %s262_s26, %s250_s2  }
  0x35   : > { %s707_s13 = sshll.u32 %s1043_s24, 1  ;;  %s272_s19 = scalar_lea.vmem [#allocation5], %s706_s8 }
  0x36   : > { %s280_s25 = sshll.u32 %s272_s19, 4  ;;  %s276_s10 = scalar_lea.hbm %s1297_s1, %s707_s13  ;;  %s281_s25 = int_to_ptr.vmem [resolvable:$true] %s280_s25 }
  0x37   : > { %s278_s15 = sshll.u32 %s276_s10, 4  ;;  %s269_s3 = scalar_lea.sflag [#allocation6], %s268_s7  ;;  %s279_s15 = int_to_ptr.hbm [resolvable:$true] %s278_s15 }
  0x38   : > { %s935_s4 = sshra.s32 %s279_s15, 4  ;;  %s942_s26 = scalar_lea.hbm %s1297_s1, 4  ;;  %s936_s4 = int_to_ptr.hbm [resolvable:$true] %s935_s4 }
  0x39   : > { %s937_s16 = scalar_lea.hbm %s936_s4, 2  ;;  %p943_p11 = scmp.lt.s32.totalorder %s936_s4, %s1297_s1 }
  0x3a   : > { %p938_p5 = scmp.ne.s32.totalorder %s936_s4, %s937_s16  ;;  %p944_p12 = scmp.lt.s32.totalorder %s942_s26, %s937_s16 }
  0x3c   : > { %p940_p8 = pnand %p938_p5, %p909_p9  ;;  %p945_p2 = por %p944_p12, %p943_p11 }
  0x3e   : > { %p941_p10 = pneg %p940_p8 }
  0x40   : > { %p946_p4 = pnand %p945_p2, %p941_p10 }
  0x42   : > { %949 = shalt.err (!%p946_p4)
}
  0x43   : > { %757 = dma.hbm_to_vmem [thread:$0]  (!%p1187_p7), %s279_s15, 32, %s281_s25, %s269_s3  }
  0x44   : > { %289 = sbr.rel (%p1117_p3) target bundleno = 892 (0x37c), region = 44  ;;  %s1225_s23 = sand.u32 (!%p1117_p3), 1, %s1035_s22  }
  0x45   : > { %s709_s9 = sshll.u32 (!%p1117_p3), %s1225_s23, 3  ;;  %s292_s7 = scalar_lea.sflag (!%p1117_p3), [#allocation3], %s1225_s23 }
  0x46   : > { %s295_s18 = scalar_lea.vmem (!%p1117_p3), [#allocation2], %s709_s9 }
  0x49   : > { %1010 = dma.done.wait (%p1164_p13), %s292_s7, 128  }
  0x4a   : > { %1012 = vsyncadd (%p1164_p13), %s292_s7, 4294967168  ;;  %s301_s29 = sand.u32 1, %s1112_s28   ;;  %s710_s27 = sshll.u32 %s1225_s23, 1 }
  0x4b   : > { %s302_s13 = scalar_lea.sflag [#allocation6], %s301_s29  ;;  %s1237_s19 = scalar_lea.vmem [#allocation5], %s710_s27 }
  0x4c   : > { %1014 = dma.done.wait (%p1164_p13), %s302_s13, 32  }
  0x4d   : > { %1016 = vsyncadd (%p1164_p13), %s302_s13, 4294967264 }
  0x4e   : > { %1018 = dma.done.wait (%p47_p1), [#allocation6], 1536  }
  0x4f   : > { %1020 = vsyncadd (%p47_p1), [#allocation6], 4294965760 }
  0x50   : > { %1022 = dma.done.wait (%p47_p1), [#allocation9], 2096  }
  0x51   : > { %1024 = vsyncadd (%p47_p1), [#allocation9], 4294965200  ;;  %v367_v0 = vld [vmem:[#allocation7 + $0x48] sm:$0xff]  ;;  %v364_v1 = vld [vmem:[#allocation7 + $0x30] sm:$0xff]  ;;  %vm378_vm0 = vcmask 261120   ;;  %v1052_v21 = vmov 0  }
  0x52   : > { %394 = vmatpush.msra.mxu1 %v367_v0  ;;  %v361_v2 = vld [vmem:[#allocation7 + $0x18] sm:$0xff]  ;;  %v358_v3 = vld [vmem:[#allocation7] sm:$0xff]  ;;  %v368_v5 = vld [vmem:[#allocation7 + $0x50] sm:$0xff]  ;;  %vm471_vm3 = vcmask 64512   ;;  %s720_s11 = sshll.u32 %s1112_s28, 3  ;;  %s354_s16 = scalar_lea.vmem [#allocation11], %s709_s9 }
  0x53   : > { %v357_v4 = vld [vmem:[%s295_s18] sm:$0xff]  ;;  %v362_v7 = vld [vmem:[#allocation7 + $0x20] sm:$0xff]  ;;  %v465_v20 = vld [vmem:[%s1237_s19] sm:$0x3]  ;;  %s572_s4 = scalar_lea.hbm %s1302_s6, %s720_s11  ;;  %s574_s2 = sshll.u32 %s354_s16, 4  ;;  %s575_s2 = int_to_ptr.vmem [resolvable:$true] %s574_s2 }
  0x54   : > { %395 = vmatpush.msra.mxu1 %v364_v1  ;;  %v365_v6 = vld [vmem:[#allocation7 + $0x38] sm:$0xff]  ;;  %v359_v8 = vld [vmem:[#allocation7 + $0x8] sm:$0xff]  ;;  %v370_v10 = vld [vmem:[#allocation8] sm:$0x7]  ;;  %vm466_vm1 = vnez %v465_v20  ;;  %s576_s20 = sshll.u32 %s572_s4, 4  ;;  %s562_s28 = scalar_lea.sflag [#allocation4], %s1225_s23  ;;  %s577_s20 = int_to_ptr.hbm [resolvable:$true] %s576_s20 }
  0x55   : > { %v373_v11 = vperm.slane %v370_v10, 1  ;;  %v372_v12 = vperm.slane %v370_v10, 0  ;;  %v369_v18 = vld [vmem:[#allocation7 + $0x58] sm:$0xff]  ;;  %v366_v19 = vld [vmem:[#allocation7 + $0x40] sm:$0xff]  ;;  %v467_v22 = vsel %vm466_vm1, 16843009, %v1052_v21 }
  0x56   : > { %396 = vmatpush.msra.mxu1 %v361_v2  ;;  %434 = vmatpush.msra.mxu2 %v369_v18  ;;  %v468_v23 = vunpack.c.0.s8 %v467_v22  ;;  %v363_v27 = vld [vmem:[#allocation7 + $0x28] sm:$0xff]  ;;  %v360_v28 = vld [vmem:[#allocation7 + $0x10] sm:$0xff]  ;;  %v374_v34 = vperm.slane %v370_v10, 2  ;;  %v534_v38 = vld [vmem:[#allocation10 + $0x78] sm:$0xff]  ;;  %s979_s26 = sshra.s32 %s577_s20, 4  ;;  %s985_s18 = scalar_lea.hbm %s1302_s6, 16  ;;  %s980_s26 = int_to_ptr.hbm [resolvable:$true] %s979_s26 }
  0x57   : > { %v533_v39 = vld [vmem:[#allocation10 + $0x70] sm:$0xff]  ;;  %539 = vmatpush.msra.mxu0 %v534_v38  ;;  %v532_v40 = vld [vmem:[#allocation10 + $0x68] sm:$0xff]  ;;  %v531_v41 = vld [vmem:[#allocation10 + $0x60] sm:$0xff]  ;;  %s981_s8 = scalar_lea.hbm %s980_s26, 8  ;;  %p986_p7 = scmp.lt.s32.totalorder %s980_s26, %s1302_s6 }
  0x58   : > { %397 = vmatpush.msra.mxu1 %v358_v3  ;;  %435 = vmatpush.msra.mxu2 %v366_v19  ;;  %vm469_vm2 = vcmp.ne.s32.totalorder %v468_v23, 0  ;;  %v530_v42 = vld [vmem:[#allocation10 + $0x58] sm:$0xff]  ;;  %v529_v43 = vld [vmem:[#allocation10 + $0x50] sm:$0xff]  ;;  %v528_v44 = vld [vmem:[#allocation10 + $0x48] sm:$0xff]  ;;  %p982_p1 = scmp.ne.s32.totalorder %s980_s26, %s981_s8  ;;  %p987_p9 = scmp.lt.s32.totalorder %s985_s18, %s981_s8 }
  0x59   : > { %715 = vmatmul.msk.f32.vlgmr.msra.gmra.mxu1 %vm378_vm0, %v357_v4  ;;  %540 = vmatpush.msra.mxu0 %v533_v39  ;;  %v527_v46 = vld [vmem:[#allocation10 + $0x40] sm:$0xff]  ;;  %v526_v47 = vld [vmem:[#allocation10 + $0x38] sm:$0xff]  ;;  %v525_v48 = vld [vmem:[#allocation10 + $0x30] sm:$0xff] }
  0x5a   : > { %414 = vmatpush.msrb.mxu1 %v368_v5  ;;  %436 = vmatpush.msra.mxu2 %v363_v27  ;;  %v524_v49 = vld [vmem:[#allocation10 + $0x28] sm:$0xff]  ;;  %v523_v52 = vld [vmem:[#allocation10 + $0x20] sm:$0xff]  ;;  %v522_v54 = vld [vmem:[#allocation10 + $0x18] sm:$0xff]  ;;  %p983_p3 = pnand %p982_p1, %p1168_p0  ;;  %p988_p5 = por %p987_p9, %p986_p7 }
  0x5b   : > { %541 = vmatpush.msra.mxu0 %v532_v40  ;;  %v521_v58 = vld [vmem:[#allocation10 + $0x10] sm:$0xff]  ;;  %v520_v60 = vld [vmem:[#allocation10 + $0x8] sm:$0xff]  ;;  %v519_v1 = vld [vmem:[#allocation10] sm:$0xff] }
  0x5c   : > { %415 = vmatpush.msrb.mxu1 %v365_v6  ;;  %437 = vmatpush.msra.mxu2 %v360_v28  ;;  %v810_v3 = vld [vmem:[%s1301_s5] ss:$0 sm:$0xff]  ;;  %p984_p13 = pneg %p983_p3 }
  0x5d   : > { %717 = vmatmul.msk.f32.vlgmr.msra.gmra.mxu2 %vm378_vm0, %v357_v4  ;;  %542 = vmatpush.msra.mxu0 %v531_v41 }
  0x5e   : > { %416 = vmatpush.msrb.mxu1 %v362_v7  ;;  %p989_p8 = pnand %p988_p5, %p984_p13 }
  0x5f   : > { %543 = vmatpush.msra.mxu0 %v530_v42 }
  0x60   : > { %417 = vmatpush.msrb.mxu1 %v359_v8 }
  0x61   : > { %716 = vmatmul.msk.f32.vlgmr.msrb.gmra.mxu1 %vm378_vm0, %v357_v4  ;;  %544 = vmatpush.msra.mxu0 %v529_v43 }
  0x63   : > { %545 = vmatpush.msra.mxu0 %v528_v44 }
  0x65   : > { %546 = vmatpush.msra.mxu0 %v527_v46 }
  0x67   : > { %547 = vmatpush.msra.mxu0 %v526_v47 }
  0x69   : > { %548 = vmatpush.msra.mxu0 %v525_v48 }
  0x6b   : > { %549 = vmatpush.msra.mxu0 %v524_v49 }
  0x6d   : > { %550 = vmatpush.msra.mxu0 %v523_v52 }
  0x6f   : > { %551 = vmatpush.msra.mxu0 %v522_v54 }
  0x71   : > { %552 = vmatpush.msra.mxu0 %v521_v58 }
  0x73   : > { %553 = vmatpush.msra.mxu0 %v520_v60 }
  0x75   : > { %554 = vmatpush.msra.mxu0 %v519_v1 }
  0xd6   : > { %v399_v9 = vpop.f32.mrf.mxu1 }
  0xd7   : > { %v400_v15 = vadd.f32 %v399_v9, %v372_v12 }
  0xd9   : > { %v442_v17 = vmax.f32 %v400_v15, 0.0 }
  0xde   : > { %v419_v13 = vpop.f32.mrf.mxu1 }
  0xdf   : > { %v420_v14 = vadd.f32 %v419_v13, %v373_v11 }
  0xe0   : > { %v439_v35 = vpop.f32.mrf.mxu2 }
  0xe1   : > { %v443_v16 = vmax.f32 %v420_v14, 0.0  ;;  %v440_v36 = vadd.f32 %v439_v35, %v374_v34 }
  0xe3   : > { %460 = vmatpush.xpose.msra.mxu3 %v443_v16  ;;  %v444_v37 = vmax.f32 %v440_v36, 0.0 }
  0xe6   : > { %461 = vmatmul.f32.vlgmr.msra.gmra.mxu3 %v442_v17 }
  0xe7   : > { %514 = vmatpush.msrb.mxu3 %v444_v37 }
 0x169   : > { %v462_v24 = vpop.f32.mrf.mxu3 }
 0x16a   : > { %v470_v25 = vsel %vm469_vm2, %v462_v24, -9e+15 }
 0x16b   : > { %v472_v26 = vsel %vm471_vm3, %v470_v25, -inf }
 0x16c   : > { %473 = vmax.xlane.f32.xlu0 %v472_v26 }
 0x1df   : > { %v474_v29 = vpop.xlane.xlu0 %473 }
 0x1e0   : > { %v475_v30 = vsub.f32 %v470_v25, %v474_v29 }
 0x1e2   : > { %v476_v31 = vmul.f32 1.442695, %v475_v30 }
 0x1e4   : > { %811 = vpow2.f32 %v476_v31 }
 0x1ea   : > { %v812_v32 = vpop.eup %811 }
 0x1eb   : > { %v478_v33 = vsel %vm471_vm3, %v812_v32, 0.0 }
 0x1ec   : > { %479 = vadd.xlane.f32.xlu0 %v478_v33 }
 0x25f   : > { %v480_v45 = vpop.xlane.xlu0 %479 }
 0x260   : > { %813 = vrcp.f32 %v480_v45  ;;  %v492_v55 = vand.u32 2147483648, %v480_v45  ;;  %v490_v57 = vand.u32 2147483647, %v480_v45  ;;  %vm486_vm5 = vweird.f32 %v480_v45 }
 0x262   : > { %v493_v61 = vor.u32 1.1754944e-38, %v492_v55  ;;  %vm491_vm7 = vcmp.eq.f32.partialorder %v490_v57, 8.507059e+37 }
 0x266   : > { %v814_v50 = vpop.eup %813 }
 0x267   : > { %v482_v51 = vmul.f32 %v814_v50, %v480_v45  ;;  %vm487_vm4 = vweird.f32 %v814_v50 }
 0x268   : > { %vm488_vm6 = vmor %vm486_vm5, %vm487_vm4 }
 0x269   : > { %v483_v53 = vsub.f32 1.0, %v482_v51 }
 0x26b   : > { %v484_v56 = vmul.f32 %v814_v50, %v483_v53 }
 0x26d   : > { %v485_v59 = vadd.f32 %v814_v50, %v484_v56 }
 0x26f   : > { %v489_v62 = vsel %vm488_vm6, %v814_v50, %v485_v59 }
 0x270   : > { %v494_v63 = vsel %vm491_vm7, %v493_v61, %v489_v62 }
 0x271   : > { %v495_v0 = vmul.f32 %v812_v32, %v494_v63 }
 0x273   : > { %718 = vmatmul.msk.f32.vlgmr.msrb.gmra.mxu3 %vm471_vm3, %v495_v0 }
 0x2f6   : > { %v516_v2 = vpop.f32.mrf.mxu3 }
 0x2f7   : > { %555 = vmatmul.f32.vlgmr.msra.gmra.mxu0 %v516_v2 }
 0x374   : > { %v556_v4 = vpop.f32.mrf.mxu0 }
 0x375   : > { %v557_v5 = vadd.f32 %v810_v3, %v556_v4 }
 0x377   : > { %v559_v6 = vmax.f32 %v557_v5, 0.0 }
 0x379   : > { %560 = vst [vmem:[%s354_s16] sm:$0xff] %v559_v6 }
 0x37a   : > { %992 = shalt.err (!%p989_p8)
}
 0x37b   : > { %739 = dma.vmem_to_hbm [thread:$0]  (%p1168_p0), %s575_s2, 128, %s577_s20, %s562_s28  }
 0x37c PF: > { %s588_s23 = sand.u32 1, %s1031_s21   ;;  %p1319_p10 = scmp.ge.s32.totalorder %s1043_s24, 2 }
 0x37d   : > { %s589_s27 = scalar_lea.sflag [#allocation4], %s588_s23 }
 0x37e   : > { %p759_p11 = pnand %p1319_p10, %p1176_p6 }
 0x380   : > { %p760_p12 = pneg %p759_p11 }
 0x382   : > { %1026 = dma.done.wait (%p760_p12), %s589_s27, 128  }
 0x383   : > { %1028 = vsyncadd (%p760_p12), %s589_s27, 4294967168  ;;  %s1320_s13 = sld [smem:[#allocation17_spill]]  ;;  %p23_p2 = scmp.ge.s32.totalorder %s1144_s30, 4  }
 0x384   : > { %s1321_s23 = sld [smem:[#allocation18_spill]]  ;;  %s1322_s21 = smov %s1035_s22 }
 0x385   : > { %s1324_s24 = smov %s1144_s30  ;;  %25 = sbr.rel (!%p23_p2) target bundleno = 12 (0xc), region = 114 }
 0x389   : > { %s1323_s22 = smov %s1320_s13 }
 0x38a   :  { %595 = vsyncpa [#allocation3], 1 }
 0x38b   :  { %597 = vsyncpa [#allocation3 + $0x1], 1 }
 0x38c   :  { %598 = vsyncpa [#allocation6], 1 }
 0x38d   :  { %600 = vsyncpa [#allocation6 + $0x1], 1 }
 0x38e   :  { %601 = vsyncpa [#allocation9], 1 }
 0x38f   :  { %602 = vsyncpa [#allocation4], 1 }
 0x390   :  { %604 = vsyncpa [#allocation4 + $0x1], 1 }

</bundles_post_ra>
